<compile_context>
chip_gen: v6e
topology: v6e:2x2x1
jax: 0.10.0
libtpu: 0.0.40
codegen_flags: <defaults>
</compile_context>

<pallas_src>
import numpy as np
import jax
import jax.numpy as jnp
from jax.experimental import pallas as pl
from jax.experimental.pallas import tpu as pltpu

_LANE = 128
_MAX_TILE_ROWS = 1024   # 1024 x 128 x 4 B = 512 KiB/block; 2 bufs x (in+out) = 2 MiB
                        # -> comfortably under the 16 MiB (v5e) / 32 MiB (v6e/v7x)
                        # default scoped-VMEM limit, independent of input size.


def _x2x_pos_kernel(w_ref, x_ref, o_ref):
    # w_ref: SMEM (1,) scalar weight ; x_ref / o_ref: VMEM (tile_rows, 128) tiles
    o_ref[...] = jnp.maximum(x_ref[...] * w_ref[0], 0.0)


def x2x_pos(x, weight):
    """Equivalent of X2X_POS.forward for x with dim >= 1.

    x:      jnp array of any shape (float32)
    weight: jnp array of shape (1,) holding the 1x1 Linear weight
    """
    orig_shape = x.shape
    flat = x.reshape(-1)
    n = flat.shape[0]

    # Lane-dense 2D slab.  When n is already a multiple of 128 (the common
    # case for NCHW-ish tensors) the reshape is a free bitcast -- no pad /
    # slice HBM round trip.  Otherwise pad only to the next 128-lane boundary.
    rem = n % _LANE
    pad = 0 if rem == 0 else _LANE - rem
    if pad:
        flat = jnp.pad(flat, (0, pad))
    rows = (n + pad) // _LANE
    x2d = flat.reshape(rows, _LANE)

    # Row tiling: full extent for small slabs (always a legal block shape),
    # otherwise a sublane-aligned tile; Pallas masks the partial edge block.
    tile_rows = rows if rows <= _MAX_TILE_ROWS else _MAX_TILE_ROWS
    grid = (pl.cdiv(rows, tile_rows),)

    out2d = pl.pallas_call(
        _x2x_pos_kernel,
        out_shape=jax.ShapeDtypeStruct((rows, _LANE), x2d.dtype),
        grid=grid,
        in_specs=[
            pl.BlockSpec(memory_space=pltpu.SMEM),               # scalar weight
            pl.BlockSpec((tile_rows, _LANE), lambda i: (i, 0)),  # streamed tiles
        ],
        out_specs=pl.BlockSpec((tile_rows, _LANE), lambda i: (i, 0)),
        compiler_params=pltpu.CompilerParams(
            dimension_semantics=("parallel",)),
        cost_estimate=pl.CostEstimate(
            flops=n,
            transcendentals=0,
            bytes_accessed=2 * n * x.dtype.itemsize),
    )(weight, x2d)

    out = out2d.reshape(-1)
    if pad:
        out = out[:n]
    out = out.reshape(orig_shape)

    # torch.squeeze(): drop all size-1 dims (the trailing unsqueeze(-1)/Linear
    # dim is already folded away by the scalar formulation).
    squeezed_shape = tuple(d for d in orig_shape if d != 1)
    return out.reshape(squeezed_shape)


if __name__ == "__main__":
    # Deterministic parameter init, matching the module: weight[0, 0] = 1.0
    weight = jnp.ones((1,), dtype=jnp.float32)

    key = jax.random.PRNGKey(0)
    k0, k1 = jax.random.split(key)

    # Main case: NCHW-style tensor, lane-aligned element count (no pad path).
    x = jax.random.normal(k0, (2, 4, 16, 16), dtype=jnp.float32)
    y = jax.block_until_ready(x2x_pos(x, weight))
    ref = jnp.maximum(x * weight[0], 0.0)
    assert y.shape == ref.shape, (y.shape, ref.shape)
    np.testing.assert_allclose(np.asarray(y), np.asarray(ref), rtol=1e-6, atol=1e-6)

    # Edge case: non-128-multiple element count + a size-1 dim (exercises the
    # pad fallback and torch.squeeze-all semantics).
    x2 = jax.random.normal(k1, (3, 1, 7), dtype=jnp.float32)
    y2 = jax.block_until_ready(x2x_pos(x2, weight))
    ref2 = jnp.maximum(x2 * weight[0], 0.0).reshape(3, 7)
    assert y2.shape == ref2.shape, (y2.shape, ref2.shape)
    np.testing.assert_allclose(np.asarray(y2), np.asarray(ref2), rtol=1e-6, atol=1e-6)

    print("KERNEL_OK")
</pallas_src>

<mosaic_0001>
module attributes {stable_mosaic.version = 11 : i64} {
  func.func @_x2x_pos_kernel(%arg0: i32, %arg1: memref<1xf32, #tpu.memory_space<smem>>, %arg2: memref<16x128xf32, #tpu.memory_space<vmem>>, %arg3: memref<16x128xf32, #tpu.memory_space<vmem>>) attributes {dimension_semantics = [#tpu.dimension_semantics<parallel>], iteration_bounds = array<i64: 1>, scalar_prefetch = 0 : i64, scratch_operands = 0 : i64, tpu.core_type = #tpu.core_type<tc>, window_params = [{transform_indices = @transform_0, window_bounds = array<i64: 1>}, {transform_indices = @transform_1, window_bounds = array<i64: 16, 128>}, {transform_indices = @transform_2, window_bounds = array<i64: 16, 128>}]} {
    %c0 = arith.constant 0 : index
    %c0_0 = arith.constant 0 : index
    %0 = vector.load %arg2[%c0, %c0_0] : memref<16x128xf32, #tpu.memory_space<vmem>>, vector<16x128xf32>
    %c0_1 = arith.constant 0 : index
    %1 = memref.load %arg1[%c0_1] : memref<1xf32, #tpu.memory_space<smem>>
    %2 = vector.broadcast %1 : f32 to vector<16x128xf32>
    %3 = arith.mulf %0, %2 : vector<16x128xf32>
    %cst = arith.constant 0.000000e+00 : f32
    %4 = vector.broadcast %cst : f32 to vector<16x128xf32>
    %5 = arith.maximumf %3, %4 : vector<16x128xf32>
    %c0_2 = arith.constant 0 : index
    %c0_3 = arith.constant 0 : index
    %6 = vector.load %arg3[%c0_2, %c0_3] : memref<16x128xf32, #tpu.memory_space<vmem>>, vector<16x128xf32>
    tpu.vector_store %arg3[%c0_2, %c0_3], %5 {strides = array<i32>} : memref<16x128xf32, #tpu.memory_space<vmem>>, vector<16x128xf32>,
    return
  }
  func.func @transform_0(%arg0: i32) -> i32 {
    %c0_i32 = arith.constant 0 : i32
    %c0_i32_0 = arith.constant 0 : i32
    return %c0_i32 : i32
  }
  func.func @transform_1(%arg0: i32) -> (i32, i32) {
    %c0_i32 = arith.constant 0 : i32
    %c0_i32_0 = arith.constant 0 : i32
    return %arg0, %c0_i32 : i32, i32
  }
  func.func @transform_2(%arg0: i32) -> (i32, i32) {
    %c0_i32 = arith.constant 0 : i32
    %c0_i32_0 = arith.constant 0 : i32
    return %arg0, %c0_i32 : i32, i32
  }
}

</mosaic_0001>

<bundles_post_ra>
// kernel: tpu_custom_call.1
= control target key start
LH: loop header
LB: loop body
LE: loop exit
PB: predicated region body
PF: predicated region fallthrough
CT: control target
= control target key end

     0   :  { %8 = vsyncpa [#allocation4], 0  ;;  %s130_s0 = inlined_call_operand.<no memory space> [shape: f32[1], index: 0, kind: input, shape index: {}]   ;;  %s131_s1 = inlined_call_operand.hbm [shape: f32[16,128], index: 1, kind: input, shape index: {}]   ;;  %s132_s2 = inlined_call_operand.hbm [shape: f32[16,128], index: 2, kind: output, shape index: {}]  }
   0x1   :  { %9 = vsyncpa [#allocation5], 0  ;;  %s102_s9 = smov [#allocation3]  }
   0x2   :  { %s17_s10 = sshll.u32 %s102_s9, 4  ;;  %s18_s10 = int_to_ptr.vmem [resolvable:$true] %s17_s10 }
   0x3   :  { %s66_s11 = scalar_lea.vmem %s18_s10, 256  ;;  %p71_p1 = scmp.lt.s32.totalorder %s18_s10, %s18_s10 }
   0x4   :  { %p67_p0 = scmp.ne.s32.totalorder %s18_s10, %s66_s11  ;;  %p72_p2 = scmp.lt.s32.totalorder %s66_s11, %s66_s11 }
   0x6   :  { %p73_p3 = por %p72_p2, %p71_p1 }
   0x8   :  { %p74_p4 = pnand %p73_p3, %p67_p0 }
   0xa   :  { %77 = shalt.err (!%p74_p4)
}
   0xb   :  { %s103_s12 = smov 128   ;;  %s104_s13 = smov 8  }
   0xc   :  { %23 = dma.hbm_to_vmem [thread:$0]  %s131_s1, 256, %s18_s10, [#allocation4], %s103_s12, %s103_s12, %s104_s13  }
   0xd   :  { %98 = dma.done.wait [#allocation4], 256  }
   0xe   :  { %99 = vsyncadd [#allocation4], 4294967040  ;;  %v30_v0 = vstv %s130_s0  ;;  %v27_v1 = vld [vmem:[#allocation3] sm:$0xff]  ;;  %v28_v2 = vld [vmem:[#allocation3 + $0x8] sm:$0xff]  ;;  %s105_s18 = smov [#allocation6]  }
   0xf   :  { %s42_s19 = sshll.u32 %s105_s18, 4  ;;  %v31_v3 = vmul.f32 %v30_v0, %v27_v1  ;;  %v32_v4 = vmul.f32 %v30_v0, %v28_v2  ;;  %s43_s19 = int_to_ptr.vmem [resolvable:$true] %s42_s19 }
  0x10   :  { %s78_s20 = scalar_lea.vmem %s43_s19, 256  ;;  %p83_p6 = scmp.lt.s32.totalorder %s43_s19, %s43_s19 }
  0x11   :  { %v33_v5 = vmax.f32 %v31_v3, 0.0  ;;  %v34_v6 = vmax.f32 %v32_v4, 0.0  ;;  %p79_p5 = scmp.ne.s32.totalorder %s43_s19, %s78_s20  ;;  %p84_p7 = scmp.lt.s32.totalorder %s78_s20, %s78_s20 }
  0x13   :  { %35 = vst [vmem:[#allocation6] sm:$0xff] %v33_v5  ;;  %36 = vst [vmem:[#allocation6 + $0x8] sm:$0xff] %v34_v6  ;;  %p85_p8 = por %p84_p7, %p83_p6 }
  0x15   :  { %p86_p9 = pnand %p85_p8, %p79_p5 }
  0x17   :  { %89 = shalt.err (!%p86_p9)
}
  0x18   :  { %48 = dma.vmem_to_hbm [thread:$0]  %s43_s19, 256, %s132_s2, [#allocation5], %s103_s12, %s103_s12, %s104_s13  }
  0x19   :  { %100 = dma.done.wait [#allocation5], 256  }
  0x1a   :  { %101 = vsyncadd [#allocation5], 4294967040 }
  0x1b   :  { %52 = vsyncpa [#allocation4], 1 }
  0x1c   :  { %53 = vsyncpa [#allocation5], 1 }

</bundles_post_ra>
